<compile_context>
chip_gen: v7x
topology: tpu7x:2x2x1
jax: 0.10.0
libtpu: 0.0.40
codegen_flags: <defaults>
</compile_context>

<pallas_src>
import math
import jax
import jax.numpy as jnp
from jax.experimental import pallas as pl
from jax.experimental.pallas import tpu as pltpu  # noqa: F401  (TPU backend)

# ---- model hyper-params (mirror the module-level globals of the script) ----
d_model = 32
d_k = 8
d_v = 8
n_heads = 4
d_ff = 64

LN_EPS = 1e-5            # nn.LayerNorm default
_SLAB_W = 3 * n_heads * d_k   # 96: widest packed row


def _layer_norm(y, gamma, beta):
    mean = jnp.mean(y, axis=-1, keepdims=True)
    var = jnp.mean((y - mean) ** 2, axis=-1, keepdims=True)   # biased, like torch
    return (y - mean) * jax.lax.rsqrt(var + LN_EPS) * gamma + beta


# ---------------------------------------------------------------------------
# Single fused kernel: QKV projection -> per-head attention -> per-head output
# projection accumulation -> add&norm -> FFN -> add&norm.
# ---------------------------------------------------------------------------
def encoder_layer_kernel(x_ref, mask_ref, w_ref, b_ref, out_ref, attn_ref):
    B, S, _ = mask_ref.shape          # static shapes
    BS = B * S
    Hq = n_heads * d_k
    Hv = n_heads * d_v

    x = x_ref[...]                    # (B*S, d_model) f32
    masked = mask_ref[...] != 0.0     # (B, S, S) bool, True == mask out

    # --- bias / LayerNorm slab (8, 96): row slices + lane-prefix slices ------
    biases = b_ref[...]
    b_qkv = biases[0:1, :]            # (1, 96)
    b_o   = biases[1:2, :d_model]
    ln1_g = biases[2:3, :d_model]
    ln1_b = biases[3:4, :d_model]
    b_ff1 = biases[4:5, :d_ff]
    b_ff2 = biases[5:6, :d_model]
    ln2_g = biases[6:7, :d_model]
    ln2_b = biases[7:8, :d_model]

    # --- packed Q/K/V projection (Q columns pre-scaled by 1/sqrt(d_k)) -------
    w_qkv = w_ref[0:d_model, :]                         # (32, 96) sublane slice
    qkv = jnp.dot(x, w_qkv, preferred_element_type=jnp.float32) + b_qkv

    q = qkv[:, 0:Hq].reshape(B, S, Hq)
    k = qkv[:, Hq:2 * Hq].reshape(B, S, Hq)
    v = qkv[:, 2 * Hq:2 * Hq + Hv].reshape(B, S, Hv)

    # --- per-head attention; W_O accumulated per head (no lane concat) -------
    proj = jnp.zeros((BS, d_model), jnp.float32)
    for h in range(n_heads):                            # static unroll, 4 iters
        qh = q[:, :, h * d_k:(h + 1) * d_k]             # (B, S, d_k)
        kh = k[:, :, h * d_k:(h + 1) * d_k]
        vh = v[:, :, h * d_v:(h + 1) * d_v]
        s = jnp.einsum('bqd,bkd->bqk', qh, kh,
                       preferred_element_type=jnp.float32)   # (B, S, S)
        s = jnp.where(masked, -1e9, s)                  # masked_fill_(-1e9)
        s = s - jnp.max(s, axis=-1, keepdims=True)
        e = jnp.exp(s)
        attn_h = e / jnp.sum(e, axis=-1, keepdims=True)  # exact softmax
        # store directly in consumer layout (B, n_heads, S, S)
        attn_ref[:, h:h + 1, :, :] = attn_h[:, None, :, :]
        ctx_h = jnp.einsum('bqk,bkd->bqd', attn_h, vh,
                           preferred_element_type=jnp.float32)    # (B, S, d_v)
        w_o_h = w_ref[d_model + h * d_v: d_model + (h + 1) * d_v, 0:d_model]
        proj = proj + jnp.dot(ctx_h.reshape(BS, d_v), w_o_h,
                              preferred_element_type=jnp.float32)
    proj = proj + b_o

    # --- residual + LayerNorm --------------------------------------------------
    y = _layer_norm(proj + x, ln1_g, ln1_b)             # (B*S, d_model)

    # --- position-wise FFN (conv1d k=1 == linear) + residual + LayerNorm -------
    w_ff1 = w_ref[2 * d_model: 3 * d_model, 0:d_ff]               # (32, 64)
    w_ff2 = w_ref[3 * d_model: 3 * d_model + d_ff, 0:d_model]     # (64, 32)
    hdn = jnp.maximum(jnp.dot(y, w_ff1, preferred_element_type=jnp.float32)
                      + b_ff1, 0.0)
    ffn = jnp.dot(hdn, w_ff2, preferred_element_type=jnp.float32) + b_ff2
    out_ref[...] = _layer_norm(ffn + y, ln2_g, ln2_b).reshape(B, S, d_model)


# ---------------------------------------------------------------------------
# Wrapper: one pallas_call, no post-processing HLOs on the outputs.
# ---------------------------------------------------------------------------
def encoder_layer(enc_inputs, attn_mask, packed):
    """enc_inputs: (B, S, d_model) f32; attn_mask: (B, S, S), nonzero == mask."""
    B, S, D = enc_inputs.shape
    x_flat = enc_inputs.reshape(B * S, D)               # contiguous, free
    mask_f = attn_mask.astype(jnp.float32)              # tiny cast only

    enc_out, attn = pl.pallas_call(
        encoder_layer_kernel,
        out_shape=[
            jax.ShapeDtypeStruct((B, S, D), jnp.float32),
            jax.ShapeDtypeStruct((B, n_heads, S, S), jnp.float32),
        ],
    )(x_flat, mask_f, packed["W_slab"], packed["bias_slab"])
    return enc_out, attn


# ---------------------------------------------------------------------------
# Parameter handling: raw (PyTorch-equivalent, (in,out) layout) -> packed slabs
# ---------------------------------------------------------------------------
def pack_params(raw):
    """Pack raw params into two slabs; folds 1/sqrt(d_k) into W_Q / b_Q."""
    inv = jnp.float32(1.0 / math.sqrt(d_k))

    def pad_cols(w):
        return jnp.pad(w, ((0, 0), (0, _SLAB_W - w.shape[1])))

    def pad_row(v):
        v = v.reshape(1, -1)
        return jnp.pad(v, ((0, 0), (0, _SLAB_W - v.shape[1])))

    w_qkv = jnp.concatenate([raw["W_Q"] * inv, raw["W_K"], raw["W_V"]], axis=1)
    w_slab = jnp.concatenate([
        pad_cols(w_qkv),            # rows   0: 32   (32, 96)
        pad_cols(raw["W_O"]),       # rows  32: 64   (32, 32)
        pad_cols(raw["W_ff1"]),     # rows  64: 96   (32, 64)
        pad_cols(raw["W_ff2"]),     # rows  96:160   (64, 32)
    ], axis=0).astype(jnp.float32)                          # (160, 96)

    b_qkv = jnp.concatenate([raw["b_Q"] * inv, raw["b_K"], raw["b_V"]]).reshape(1, -1)
    bias_slab = jnp.concatenate([
        b_qkv,
        pad_row(raw["b_O"]), pad_row(raw["ln1_g"]), pad_row(raw["ln1_b"]),
        pad_row(raw["b_ff1"]), pad_row(raw["b_ff2"]),
        pad_row(raw["ln2_g"]), pad_row(raw["ln2_b"]),
    ], axis=0).astype(jnp.float32)                          # (8, 96)

    return {"W_slab": w_slab, "bias_slab": bias_slab}


def init_raw_params(key):
    ks = jax.random.split(key, 6)
    scale = 0.05
    f32 = jnp.float32
    return {
        "W_Q": scale * jax.random.normal(ks[0], (d_model, n_heads * d_k), f32),
        "b_Q": jnp.zeros((n_heads * d_k,), f32),
        "W_K": scale * jax.random.normal(ks[1], (d_model, n_heads * d_k), f32),
        "b_K": jnp.zeros((n_heads * d_k,), f32),
        "W_V": scale * jax.random.normal(ks[2], (d_model, n_heads * d_v), f32),
        "b_V": jnp.zeros((n_heads * d_v,), f32),
        "W_O": scale * jax.random.normal(ks[3], (n_heads * d_v, d_model), f32),
        "b_O": jnp.zeros((d_model,), f32),
        "ln1_g": jnp.ones((d_model,), f32),
        "ln1_b": jnp.zeros((d_model,), f32),
        # Conv1d(k=1) weights folded to (in, out) linears
        "W_ff1": scale * jax.random.normal(ks[4], (d_model, d_ff), f32),
        "b_ff1": jnp.zeros((d_ff,), f32),
        "W_ff2": scale * jax.random.normal(ks[5], (d_ff, d_model), f32),
        "b_ff2": jnp.zeros((d_model,), f32),
        "ln2_g": jnp.ones((d_model,), f32),
        "ln2_b": jnp.zeros((d_model,), f32),
    }


# ---------------------------------------------------------------------------
# Pure-JAX reference (mirrors the PyTorch module exactly) for a sanity check.
# ---------------------------------------------------------------------------
def encoder_layer_reference(x, mask, p):
    B, S, D = x.shape
    lin = lambda t, w, b: t @ w + b
    q = lin(x, p["W_Q"], p["b_Q"]).reshape(B, S, n_heads, d_k).transpose(0, 2, 1, 3)
    k = lin(x, p["W_K"], p["b_K"]).reshape(B, S, n_heads, d_k).transpose(0, 2, 1, 3)
    v = lin(x, p["W_V"], p["b_V"]).reshape(B, S, n_heads, d_v).transpose(0, 2, 1, 3)
    scores = jnp.einsum('bhqd,bhkd->bhqk', q, k) / jnp.sqrt(jnp.float32(d_k))
    scores = jnp.where(mask[:, None, :, :], -1e9, scores)
    attn = jax.nn.softmax(scores, axis=-1)
    ctx = jnp.einsum('bhqk,bhkd->bhqd', attn, v)
    ctx = ctx.transpose(0, 2, 1, 3).reshape(B, S, n_heads * d_v)
    out = lin(ctx, p["W_O"], p["b_O"])
    y = _layer_norm(out + x, p["ln1_g"], p["ln1_b"])
    h = jax.nn.relu(lin(y, p["W_ff1"], p["b_ff1"]))
    f = lin(h, p["W_ff2"], p["b_ff2"])
    return _layer_norm(f + y, p["ln2_g"], p["ln2_b"]), attn


if __name__ == "__main__":
    B, S = 2, 8
    key = jax.random.PRNGKey(0)
    k_x, k_p = jax.random.split(key)

    enc_inputs = jax.random.normal(k_x, (B, S, d_model), jnp.float32)
    # pad-style self-attention mask: mask out the last 2 key positions of batch 1
    mask = jnp.zeros((B, S, S), jnp.bool_).at[1, :, -2:].set(True)

    raw = init_raw_params(k_p)
    packed = pack_params(raw)          # done once at init time, not per call

    enc_outputs, attn = jax.jit(encoder_layer)(enc_inputs, mask, packed)
    jax.block_until_ready((enc_outputs, attn))

    assert enc_outputs.shape == (B, S, d_model)
    assert attn.shape == (B, n_heads, S, S)
    assert bool(jnp.all(jnp.isfinite(enc_outputs)))
    assert bool(jnp.all(jnp.isfinite(attn)))
    # exact softmax -> rows sum to 1
    assert bool(jnp.allclose(jnp.sum(attn, axis=-1), 1.0, atol=1e-5))

    # compare against the pure-JAX / PyTorch-equivalent reference
    ref_out, ref_attn = encoder_layer_reference(enc_inputs, mask, raw)
    assert bool(jnp.allclose(enc_outputs, ref_out, atol=1e-4, rtol=1e-4))
    assert bool(jnp.allclose(attn, ref_attn, atol=1e-5, rtol=1e-4))

    print("KERNEL_OK")
</pallas_src>

<mosaic_0001>
module attributes {stable_mosaic.version = 11 : i64} {
  func.func @encoder_layer_kernel(%arg0: memref<16x32xf32, #tpu.memory_space<vmem>>, %arg1: memref<2x8x8xf32, #tpu.memory_space<vmem>>, %arg2: memref<160x96xf32, #tpu.memory_space<vmem>>, %arg3: memref<8x96xf32, #tpu.memory_space<vmem>>, %arg4: memref<2x8x32xf32, #tpu.memory_space<vmem>>, %arg5: memref<2x4x8x8xf32, #tpu.memory_space<vmem>>) attributes {dimension_semantics = [], scalar_prefetch = 0 : i64, scratch_operands = 0 : i64, tpu.core_type = #tpu.core_type<tc>} {
    %c0 = arith.constant 0 : index
    %c0_0 = arith.constant 0 : index
    %0 = vector.load %arg0[%c0, %c0_0] : memref<16x32xf32, #tpu.memory_space<vmem>>, vector<16x32xf32>
    %c0_1 = arith.constant 0 : index
    %c0_2 = arith.constant 0 : index
    %c0_3 = arith.constant 0 : index
    %1 = vector.load %arg1[%c0_1, %c0_2, %c0_3] : memref<2x8x8xf32, #tpu.memory_space<vmem>>, vector<2x8x8xf32>
    %cst = arith.constant 0.000000e+00 : f32
    %2 = vector.broadcast %cst : f32 to vector<2x8x8xf32>
    %3 = arith.cmpf one, %1, %2 : vector<2x8x8xf32>
    %c0_4 = arith.constant 0 : index
    %c0_5 = arith.constant 0 : index
    %4 = vector.load %arg3[%c0_4, %c0_5] : memref<8x96xf32, #tpu.memory_space<vmem>>, vector<8x96xf32>
    %5 = vector.extract_strided_slice %4 {offsets = [0, 0], sizes = [1, 96], strides = [1, 1]} : vector<8x96xf32> to vector<1x96xf32>
    %6 = vector.extract_strided_slice %4 {offsets = [1, 0], sizes = [1, 32], strides = [1, 1]} : vector<8x96xf32> to vector<1x32xf32>
    %7 = vector.extract_strided_slice %4 {offsets = [2, 0], sizes = [1, 32], strides = [1, 1]} : vector<8x96xf32> to vector<1x32xf32>
    %8 = vector.extract_strided_slice %4 {offsets = [3, 0], sizes = [1, 32], strides = [1, 1]} : vector<8x96xf32> to vector<1x32xf32>
    %9 = vector.extract_strided_slice %4 {offsets = [4, 0], sizes = [1, 64], strides = [1, 1]} : vector<8x96xf32> to vector<1x64xf32>
    %10 = vector.extract_strided_slice %4 {offsets = [5, 0], sizes = [1, 32], strides = [1, 1]} : vector<8x96xf32> to vector<1x32xf32>
    %11 = vector.extract_strided_slice %4 {offsets = [6, 0], sizes = [1, 32], strides = [1, 1]} : vector<8x96xf32> to vector<1x32xf32>
    %12 = vector.extract_strided_slice %4 {offsets = [7, 0], sizes = [1, 32], strides = [1, 1]} : vector<8x96xf32> to vector<1x32xf32>
    %c0_6 = arith.constant 0 : index
    %c0_7 = arith.constant 0 : index
    %13 = vector.load %arg2[%c0_6, %c0_7] : memref<160x96xf32, #tpu.memory_space<vmem>>, vector<32x96xf32>
    %cst_8 = arith.constant dense<0.000000e+00> : vector<16x96xf32>
    %14 = tpu.matmul %0, %13, %cst_8 {dimension_numbers = #tpu.dot_dimension_numbers<[1], [0], [0], [1], [0, 0, 1, 1], [], []>} : vector<16x32xf32>, vector<32x96xf32>, vector<16x96xf32> -> vector<16x96xf32>
    %15 = vector.broadcast %5 : vector<1x96xf32> to vector<16x96xf32>
    %16 = arith.addf %14, %15 : vector<16x96xf32>
    %17 = vector.extract_strided_slice %16 {offsets = [0, 0], sizes = [16, 32], strides = [1, 1]} : vector<16x96xf32> to vector<16x32xf32>
    %18 = vector.shape_cast %17 : vector<16x32xf32> to vector<2x8x32xf32>
    %19 = vector.extract_strided_slice %16 {offsets = [0, 32], sizes = [16, 32], strides = [1, 1]} : vector<16x96xf32> to vector<16x32xf32>
    %20 = vector.shape_cast %19 : vector<16x32xf32> to vector<2x8x32xf32>
    %21 = vector.extract_strided_slice %16 {offsets = [0, 64], sizes = [16, 32], strides = [1, 1]} : vector<16x96xf32> to vector<16x32xf32>
    %22 = vector.shape_cast %21 : vector<16x32xf32> to vector<2x8x32xf32>
    %cst_9 = arith.constant 0.000000e+00 : f32
    %23 = vector.broadcast %cst_9 : f32 to vector<16x32xf32>
    %24 = vector.extract_strided_slice %18 {offsets = [0, 0, 0], sizes = [2, 8, 8], strides = [1, 1, 1]} : vector<2x8x32xf32> to vector<2x8x8xf32>
    %25 = vector.extract_strided_slice %20 {offsets = [0, 0, 0], sizes = [2, 8, 8], strides = [1, 1, 1]} : vector<2x8x32xf32> to vector<2x8x8xf32>
    %26 = vector.extract_strided_slice %22 {offsets = [0, 0, 0], sizes = [2, 8, 8], strides = [1, 1, 1]} : vector<2x8x32xf32> to vector<2x8x8xf32>
    "tpu.trace_start"() <{level = 10 : i32, message = "bqd,bkd->bqk"}> : () -> ()
    %cst_10 = arith.constant dense<0.000000e+00> : vector<2x8x8xf32>
    %27 = tpu.matmul %24, %25, %cst_10 {dimension_numbers = #tpu.dot_dimension_numbers<[2], [2], [1], [1], [0, 0, 0, 1, 1, 1], [0], [0]>} : vector<2x8x8xf32>, vector<2x8x8xf32>, vector<2x8x8xf32> -> vector<2x8x8xf32>
    %cst_11 = arith.constant -1.000000e+09 : f32
    "tpu.trace_stop"() : () -> ()
    %28 = vector.broadcast %cst_11 : f32 to vector<2x8x8xf32>
    %29 = arith.select %3, %28, %27 : vector<2x8x8xi1>, vector<2x8x8xf32>
    %cst_12 = arith.constant dense<0xFF800000> : vector<2x8xf32>
    %30 = vector.multi_reduction <maximumf>, %29, %cst_12 [2] : vector<2x8x8xf32> to vector<2x8xf32>
    %31 = vector.shape_cast %30 : vector<2x8xf32> to vector<2x8x1xf32>
    %32 = vector.broadcast %31 : vector<2x8x1xf32> to vector<2x8x8xf32>
    %33 = arith.subf %29, %32 : vector<2x8x8xf32>
    %34 = math.exp %33 : vector<2x8x8xf32>
    %cst_13 = arith.constant dense<0.000000e+00> : vector<2x8xf32>
    %35 = vector.multi_reduction <add>, %34, %cst_13 [2] : vector<2x8x8xf32> to vector<2x8xf32>
    %36 = vector.shape_cast %35 : vector<2x8xf32> to vector<2x8x1xf32>
    %37 = vector.broadcast %36 : vector<2x8x1xf32> to vector<2x8x8xf32>
    %38 = arith.divf %34, %37 : vector<2x8x8xf32>
    %39 = vector.shape_cast %38 : vector<2x8x8xf32> to vector<2x1x8x8xf32>
    %c0_14 = arith.constant 0 : index
    %c0_15 = arith.constant 0 : index
    %c0_16 = arith.constant 0 : index
    %c0_17 = arith.constant 0 : index
    %40 = vector.load %arg5[%c0_14, %c0_15, %c0_16, %c0_17] : memref<2x4x8x8xf32, #tpu.memory_space<vmem>>, vector<2x1x8x8xf32>
    tpu.vector_store %arg5[%c0_14, %c0_15, %c0_16, %c0_17], %39 {strides = array<i32>} : memref<2x4x8x8xf32, #tpu.memory_space<vmem>>, vector<2x1x8x8xf32>,
    "tpu.trace_start"() <{level = 10 : i32, message = "bqk,bkd->bqd"}> : () -> ()
    %cst_18 = arith.constant dense<0.000000e+00> : vector<2x8x8xf32>
    %41 = tpu.matmul %38, %26, %cst_18 {dimension_numbers = #tpu.dot_dimension_numbers<[2], [1], [1], [2], [0, 0, 0, 1, 1, 2], [0], [0]>} : vector<2x8x8xf32>, vector<2x8x8xf32>, vector<2x8x8xf32> -> vector<2x8x8xf32>
    "tpu.trace_stop"() : () -> ()
    %c32 = arith.constant 32 : index
    %c0_19 = arith.constant 0 : index
    %42 = vector.load %arg2[%c32, %c0_19] : memref<160x96xf32, #tpu.memory_space<vmem>>, vector<8x32xf32>
    %43 = vector.shape_cast %41 : vector<2x8x8xf32> to vector<16x8xf32>
    %cst_20 = arith.constant dense<0.000000e+00> : vector<16x32xf32>
    %44 = tpu.matmul %43, %42, %cst_20 {dimension_numbers = #tpu.dot_dimension_numbers<[1], [0], [0], [1], [0, 0, 1, 1], [], []>} : vector<16x8xf32>, vector<8x32xf32>, vector<16x32xf32> -> vector<16x32xf32>
    %45 = arith.addf %23, %44 : vector<16x32xf32>
    %46 = vector.extract_strided_slice %18 {offsets = [0, 0, 8], sizes = [2, 8, 8], strides = [1, 1, 1]} : vector<2x8x32xf32> to vector<2x8x8xf32>
    %47 = vector.extract_strided_slice %20 {offsets = [0, 0, 8], sizes = [2, 8, 8], strides = [1, 1, 1]} : vector<2x8x32xf32> to vector<2x8x8xf32>
    %48 = vector.extract_strided_slice %22 {offsets = [0, 0, 8], sizes = [2, 8, 8], strides = [1, 1, 1]} : vector<2x8x32xf32> to vector<2x8x8xf32>
    "tpu.trace_start"() <{level = 10 : i32, message = "bqd,bkd->bqk"}> : () -> ()
    %cst_21 = arith.constant dense<0.000000e+00> : vector<2x8x8xf32>
    %49 = tpu.matmul %46, %47, %cst_21 {dimension_numbers = #tpu.dot_dimension_numbers<[2], [2], [1], [1], [0, 0, 0, 1, 1, 1], [0], [0]>} : vector<2x8x8xf32>, vector<2x8x8xf32>, vector<2x8x8xf32> -> vector<2x8x8xf32>
    %cst_22 = arith.constant -1.000000e+09 : f32
    "tpu.trace_stop"() : () -> ()
    %50 = vector.broadcast %cst_22 : f32 to vector<2x8x8xf32>
    %51 = arith.select %3, %50, %49 : vector<2x8x8xi1>, vector<2x8x8xf32>
    %cst_23 = arith.constant dense<0xFF800000> : vector<2x8xf32>
    %52 = vector.multi_reduction <maximumf>, %51, %cst_23 [2] : vector<2x8x8xf32> to vector<2x8xf32>
    %53 = vector.shape_cast %52 : vector<2x8xf32> to vector<2x8x1xf32>
    %54 = vector.broadcast %53 : vector<2x8x1xf32> to vector<2x8x8xf32>
    %55 = arith.subf %51, %54 : vector<2x8x8xf32>
    %56 = math.exp %55 : vector<2x8x8xf32>
    %cst_24 = arith.constant dense<0.000000e+00> : vector<2x8xf32>
    %57 = vector.multi_reduction <add>, %56, %cst_24 [2] : vector<2x8x8xf32> to vector<2x8xf32>
    %58 = vector.shape_cast %57 : vector<2x8xf32> to vector<2x8x1xf32>
    %59 = vector.broadcast %58 : vector<2x8x1xf32> to vector<2x8x8xf32>
    %60 = arith.divf %56, %59 : vector<2x8x8xf32>
    %61 = vector.shape_cast %60 : vector<2x8x8xf32> to vector<2x1x8x8xf32>
    %c0_25 = arith.constant 0 : index
    %c1 = arith.constant 1 : index
    %c0_26 = arith.constant 0 : index
    %c0_27 = arith.constant 0 : index
    %62 = vector.load %arg5[%c0_25, %c1, %c0_26, %c0_27] : memref<2x4x8x8xf32, #tpu.memory_space<vmem>>, vector<2x1x8x8xf32>
    tpu.vector_store %arg5[%c0_25, %c1, %c0_26, %c0_27], %61 {strides = array<i32>} : memref<2x4x8x8xf32, #tpu.memory_space<vmem>>, vector<2x1x8x8xf32>,
    "tpu.trace_start"() <{level = 10 : i32, message = "bqk,bkd->bqd"}> : () -> ()
    %cst_28 = arith.constant dense<0.000000e+00> : vector<2x8x8xf32>
    %63 = tpu.matmul %60, %48, %cst_28 {dimension_numbers = #tpu.dot_dimension_numbers<[2], [1], [1], [2], [0, 0, 0, 1, 1, 2], [0], [0]>} : vector<2x8x8xf32>, vector<2x8x8xf32>, vector<2x8x8xf32> -> vector<2x8x8xf32>
    "tpu.trace_stop"() : () -> ()
    %c40 = arith.constant 40 : index
    %c0_29 = arith.constant 0 : index
    %64 = vector.load %arg2[%c40, %c0_29] : memref<160x96xf32, #tpu.memory_space<vmem>>, vector<8x32xf32>
    %65 = vector.shape_cast %63 : vector<2x8x8xf32> to vector<16x8xf32>
    %cst_30 = arith.constant dense<0.000000e+00> : vector<16x32xf32>
    %66 = tpu.matmul %65, %64, %cst_30 {dimension_numbers = #tpu.dot_dimension_numbers<[1], [0], [0], [1], [0, 0, 1, 1], [], []>} : vector<16x8xf32>, vector<8x32xf32>, vector<16x32xf32> -> vector<16x32xf32>
    %67 = arith.addf %45, %66 : vector<16x32xf32>
    %68 = vector.extract_strided_slice %18 {offsets = [0, 0, 16], sizes = [2, 8, 8], strides = [1, 1, 1]} : vector<2x8x32xf32> to vector<2x8x8xf32>
    %69 = vector.extract_strided_slice %20 {offsets = [0, 0, 16], sizes = [2, 8, 8], strides = [1, 1, 1]} : vector<2x8x32xf32> to vector<2x8x8xf32>
    %70 = vector.extract_strided_slice %22 {offsets = [0, 0, 16], sizes = [2, 8, 8], strides = [1, 1, 1]} : vector<2x8x32xf32> to vector<2x8x8xf32>
    "tpu.trace_start"() <{level = 10 : i32, message = "bqd,bkd->bqk"}> : () -> ()
    %cst_31 = arith.constant dense<0.000000e+00> : vector<2x8x8xf32>
    %71 = tpu.matmul %68, %69, %cst_31 {dimension_numbers = #tpu.dot_dimension_numbers<[2], [2], [1], [1], [0, 0, 0, 1, 1, 1], [0], [0]>} : vector<2x8x8xf32>, vector<2x8x8xf32>, vector<2x8x8xf32> -> vector<2x8x8xf32>
    %cst_32 = arith.constant -1.000000e+09 : f32
    "tpu.trace_stop"() : () -> ()
    %72 = vector.broadcast %cst_32 : f32 to vector<2x8x8xf32>
    %73 = arith.select %3, %72, %71 : vector<2x8x8xi1>, vector<2x8x8xf32>
    %cst_33 = arith.constant dense<0xFF800000> : vector<2x8xf32>
    %74 = vector.multi_reduction <maximumf>, %73, %cst_33 [2] : vector<2x8x8xf32> to vector<2x8xf32>
    %75 = vector.shape_cast %74 : vector<2x8xf32> to vector<2x8x1xf32>
    %76 = vector.broadcast %75 : vector<2x8x1xf32> to vector<2x8x8xf32>
    %77 = arith.subf %73, %76 : vector<2x8x8xf32>
    %78 = math.exp %77 : vector<2x8x8xf32>
    %cst_34 = arith.constant dense<0.000000e+00> : vector<2x8xf32>
    %79 = vector.multi_reduction <add>, %78, %cst_34 [2] : vector<2x8x8xf32> to vector<2x8xf32>
    %80 = vector.shape_cast %79 : vector<2x8xf32> to vector<2x8x1xf32>
    %81 = vector.broadcast %80 : vector<2x8x1xf32> to vector<2x8x8xf32>
    %82 = arith.divf %78, %81 : vector<2x8x8xf32>
    %83 = vector.shape_cast %82 : vector<2x8x8xf32> to vector<2x1x8x8xf32>
    %c0_35 = arith.constant 0 : index
    %c2 = arith.constant 2 : index
    %c0_36 = arith.constant 0 : index
    %c0_37 = arith.constant 0 : index
    %84 = vector.load %arg5[%c0_35, %c2, %c0_36, %c0_37] : memref<2x4x8x8xf32, #tpu.memory_space<vmem>>, vector<2x1x8x8xf32>
    tpu.vector_store %arg5[%c0_35, %c2, %c0_36, %c0_37], %83 {strides = array<i32>} : memref<2x4x8x8xf32, #tpu.memory_space<vmem>>, vector<2x1x8x8xf32>,
    "tpu.trace_start"() <{level = 10 : i32, message = "bqk,bkd->bqd"}> : () -> ()
    %cst_38 = arith.constant dense<0.000000e+00> : vector<2x8x8xf32>
    %85 = tpu.matmul %82, %70, %cst_38 {dimension_numbers = #tpu.dot_dimension_numbers<[2], [1], [1], [2], [0, 0, 0, 1, 1, 2], [0], [0]>} : vector<2x8x8xf32>, vector<2x8x8xf32>, vector<2x8x8xf32> -> vector<2x8x8xf32>
    "tpu.trace_stop"() : () -> ()
    %c48 = arith.constant 48 : index
    %c0_39 = arith.constant 0 : index
    %86 = vector.load %arg2[%c48, %c0_39] : memref<160x96xf32, #tpu.memory_space<vmem>>, vector<8x32xf32>
    %87 = vector.shape_cast %85 : vector<2x8x8xf32> to vector<16x8xf32>
    %cst_40 = arith.constant dense<0.000000e+00> : vector<16x32xf32>
    %88 = tpu.matmul %87, %86, %cst_40 {dimension_numbers = #tpu.dot_dimension_numbers<[1], [0], [0], [1], [0, 0, 1, 1], [], []>} : vector<16x8xf32>, vector<8x32xf32>, vector<16x32xf32> -> vector<16x32xf32>
    %89 = arith.addf %67, %88 : vector<16x32xf32>
    %90 = vector.extract_strided_slice %18 {offsets = [0, 0, 24], sizes = [2, 8, 8], strides = [1, 1, 1]} : vector<2x8x32xf32> to vector<2x8x8xf32>
    %91 = vector.extract_strided_slice %20 {offsets = [0, 0, 24], sizes = [2, 8, 8], strides = [1, 1, 1]} : vector<2x8x32xf32> to vector<2x8x8xf32>
    %92 = vector.extract_strided_slice %22 {offsets = [0, 0, 24], sizes = [2, 8, 8], strides = [1, 1, 1]} : vector<2x8x32xf32> to vector<2x8x8xf32>
    "tpu.trace_start"() <{level = 10 : i32, message = "bqd,bkd->bqk"}> : () -> ()
    %cst_41 = arith.constant dense<0.000000e+00> : vector<2x8x8xf32>
    %93 = tpu.matmul %90, %91, %cst_41 {dimension_numbers = #tpu.dot_dimension_numbers<[2], [2], [1], [1], [0, 0, 0, 1, 1, 1], [0], [0]>} : vector<2x8x8xf32>, vector<2x8x8xf32>, vector<2x8x8xf32> -> vector<2x8x8xf32>
    %cst_42 = arith.constant -1.000000e+09 : f32
    "tpu.trace_stop"() : () -> ()
    %94 = vector.broadcast %cst_42 : f32 to vector<2x8x8xf32>
    %95 = arith.select %3, %94, %93 : vector<2x8x8xi1>, vector<2x8x8xf32>
    %cst_43 = arith.constant dense<0xFF800000> : vector<2x8xf32>
    %96 = vector.multi_reduction <maximumf>, %95, %cst_43 [2] : vector<2x8x8xf32> to vector<2x8xf32>
    %97 = vector.shape_cast %96 : vector<2x8xf32> to vector<2x8x1xf32>
    %98 = vector.broadcast %97 : vector<2x8x1xf32> to vector<2x8x8xf32>
    %99 = arith.subf %95, %98 : vector<2x8x8xf32>
    %100 = math.exp %99 : vector<2x8x8xf32>
    %cst_44 = arith.constant dense<0.000000e+00> : vector<2x8xf32>
    %101 = vector.multi_reduction <add>, %100, %cst_44 [2] : vector<2x8x8xf32> to vector<2x8xf32>
    %102 = vector.shape_cast %101 : vector<2x8xf32> to vector<2x8x1xf32>
    %103 = vector.broadcast %102 : vector<2x8x1xf32> to vector<2x8x8xf32>
    %104 = arith.divf %100, %103 : vector<2x8x8xf32>
    %105 = vector.shape_cast %104 : vector<2x8x8xf32> to vector<2x1x8x8xf32>
    %c0_45 = arith.constant 0 : index
    %c3 = arith.constant 3 : index
    %c0_46 = arith.constant 0 : index
    %c0_47 = arith.constant 0 : index
    %106 = vector.load %arg5[%c0_45, %c3, %c0_46, %c0_47] : memref<2x4x8x8xf32, #tpu.memory_space<vmem>>, vector<2x1x8x8xf32>
    tpu.vector_store %arg5[%c0_45, %c3, %c0_46, %c0_47], %105 {strides = array<i32>} : memref<2x4x8x8xf32, #tpu.memory_space<vmem>>, vector<2x1x8x8xf32>,
    "tpu.trace_start"() <{level = 10 : i32, message = "bqk,bkd->bqd"}> : () -> ()
    %cst_48 = arith.constant dense<0.000000e+00> : vector<2x8x8xf32>
    %107 = tpu.matmul %104, %92, %cst_48 {dimension_numbers = #tpu.dot_dimension_numbers<[2], [1], [1], [2], [0, 0, 0, 1, 1, 2], [0], [0]>} : vector<2x8x8xf32>, vector<2x8x8xf32>, vector<2x8x8xf32> -> vector<2x8x8xf32>
    "tpu.trace_stop"() : () -> ()
    %c56 = arith.constant 56 : index
    %c0_49 = arith.constant 0 : index
    %108 = vector.load %arg2[%c56, %c0_49] : memref<160x96xf32, #tpu.memory_space<vmem>>, vector<8x32xf32>
    %109 = vector.shape_cast %107 : vector<2x8x8xf32> to vector<16x8xf32>
    %cst_50 = arith.constant dense<0.000000e+00> : vector<16x32xf32>
    %110 = tpu.matmul %109, %108, %cst_50 {dimension_numbers = #tpu.dot_dimension_numbers<[1], [0], [0], [1], [0, 0, 1, 1], [], []>} : vector<16x8xf32>, vector<8x32xf32>, vector<16x32xf32> -> vector<16x32xf32>
    %111 = arith.addf %89, %110 : vector<16x32xf32>
    %112 = vector.broadcast %6 : vector<1x32xf32> to vector<16x32xf32>
    %113 = arith.addf %111, %112 : vector<16x32xf32>
    %114 = arith.addf %113, %0 : vector<16x32xf32>
    %cst_51 = arith.constant dense<0.000000e+00> : vector<16xf32>
    %115 = vector.multi_reduction <add>, %114, %cst_51 [1] : vector<16x32xf32> to vector<16xf32>
    %116 = vector.shape_cast %115 : vector<16xf32> to vector<16x1xf32>
    %cst_52 = arith.constant 3.200000e+01 : f32
    %117 = vector.broadcast %cst_52 : f32 to vector<16x1xf32>
    %118 = arith.divf %116, %117 : vector<16x1xf32>
    %119 = vector.broadcast %118 : vector<16x1xf32> to vector<16x32xf32>
    %120 = arith.subf %114, %119 : vector<16x32xf32>
    %121 = arith.mulf %120, %120 : vector<16x32xf32>
    %cst_53 = arith.constant dense<0.000000e+00> : vector<16xf32>
    %122 = vector.multi_reduction <add>, %121, %cst_53 [1] : vector<16x32xf32> to vector<16xf32>
    %123 = vector.shape_cast %122 : vector<16xf32> to vector<16x1xf32>
    %cst_54 = arith.constant 3.200000e+01 : f32
    %124 = vector.broadcast %cst_54 : f32 to vector<16x1xf32>
    %125 = arith.divf %123, %124 : vector<16x1xf32>
    %126 = vector.broadcast %118 : vector<16x1xf32> to vector<16x32xf32>
    %127 = arith.subf %114, %126 : vector<16x32xf32>
    %cst_55 = arith.constant 9.99999974E-6 : f32
    %128 = vector.broadcast %cst_55 : f32 to vector<16x1xf32>
    %129 = arith.addf %125, %128 : vector<16x1xf32>
    %130 = math.rsqrt %129 : vector<16x1xf32>
    %131 = vector.broadcast %130 : vector<16x1xf32> to vector<16x32xf32>
    %132 = arith.mulf %127, %131 : vector<16x32xf32>
    %133 = vector.broadcast %7 : vector<1x32xf32> to vector<16x32xf32>
    %134 = arith.mulf %132, %133 : vector<16x32xf32>
    %135 = vector.broadcast %8 : vector<1x32xf32> to vector<16x32xf32>
    %136 = arith.addf %134, %135 : vector<16x32xf32>
    %c64 = arith.constant 64 : index
    %c0_56 = arith.constant 0 : index
    %137 = vector.load %arg2[%c64, %c0_56] : memref<160x96xf32, #tpu.memory_space<vmem>>, vector<32x64xf32>
    %c96 = arith.constant 96 : index
    %c0_57 = arith.constant 0 : index
    %138 = vector.load %arg2[%c96, %c0_57] : memref<160x96xf32, #tpu.memory_space<vmem>>, vector<64x32xf32>
    %cst_58 = arith.constant dense<0.000000e+00> : vector<16x64xf32>
    %139 = tpu.matmul %136, %137, %cst_58 {dimension_numbers = #tpu.dot_dimension_numbers<[1], [0], [0], [1], [0, 0, 1, 1], [], []>} : vector<16x32xf32>, vector<32x64xf32>, vector<16x64xf32> -> vector<16x64xf32>
    %140 = vector.broadcast %9 : vector<1x64xf32> to vector<16x64xf32>
    %141 = arith.addf %139, %140 : vector<16x64xf32>
    %cst_59 = arith.constant 0.000000e+00 : f32
    %142 = vector.broadcast %cst_59 : f32 to vector<16x64xf32>
    %143 = arith.maximumf %141, %142 : vector<16x64xf32>
    %cst_60 = arith.constant dense<0.000000e+00> : vector<16x32xf32>
    %144 = tpu.matmul %143, %138, %cst_60 {dimension_numbers = #tpu.dot_dimension_numbers<[1], [0], [0], [1], [0, 0, 1, 1], [], []>} : vector<16x64xf32>, vector<64x32xf32>, vector<16x32xf32> -> vector<16x32xf32>
    %145 = vector.broadcast %10 : vector<1x32xf32> to vector<16x32xf32>
    %146 = arith.addf %144, %145 : vector<16x32xf32>
    %147 = arith.addf %146, %136 : vector<16x32xf32>
    %cst_61 = arith.constant dense<0.000000e+00> : vector<16xf32>
    %148 = vector.multi_reduction <add>, %147, %cst_61 [1] : vector<16x32xf32> to vector<16xf32>
    %149 = vector.shape_cast %148 : vector<16xf32> to vector<16x1xf32>
    %cst_62 = arith.constant 3.200000e+01 : f32
    %150 = vector.broadcast %cst_62 : f32 to vector<16x1xf32>
    %151 = arith.divf %149, %150 : vector<16x1xf32>
    %152 = vector.broadcast %151 : vector<16x1xf32> to vector<16x32xf32>
    %153 = arith.subf %147, %152 : vector<16x32xf32>
    %154 = arith.mulf %153, %153 : vector<16x32xf32>
    %cst_63 = arith.constant dense<0.000000e+00> : vector<16xf32>
    %155 = vector.multi_reduction <add>, %154, %cst_63 [1] : vector<16x32xf32> to vector<16xf32>
    %156 = vector.shape_cast %155 : vector<16xf32> to vector<16x1xf32>
    %cst_64 = arith.constant 3.200000e+01 : f32
    %157 = vector.broadcast %cst_64 : f32 to vector<16x1xf32>
    %158 = arith.divf %156, %157 : vector<16x1xf32>
    %159 = vector.broadcast %151 : vector<16x1xf32> to vector<16x32xf32>
    %160 = arith.subf %147, %159 : vector<16x32xf32>
    %cst_65 = arith.constant 9.99999974E-6 : f32
    %161 = vector.broadcast %cst_65 : f32 to vector<16x1xf32>
    %162 = arith.addf %158, %161 : vector<16x1xf32>
    %163 = math.rsqrt %162 : vector<16x1xf32>
    %164 = vector.broadcast %163 : vector<16x1xf32> to vector<16x32xf32>
    %165 = arith.mulf %160, %164 : vector<16x32xf32>
    %166 = vector.broadcast %11 : vector<1x32xf32> to vector<16x32xf32>
    %167 = arith.mulf %165, %166 : vector<16x32xf32>
    %168 = vector.broadcast %12 : vector<1x32xf32> to vector<16x32xf32>
    %169 = arith.addf %167, %168 : vector<16x32xf32>
    %170 = vector.shape_cast %169 : vector<16x32xf32> to vector<2x8x32xf32>
    %c0_66 = arith.constant 0 : index
    %c0_67 = arith.constant 0 : index
    %c0_68 = arith.constant 0 : index
    %171 = vector.load %arg4[%c0_66, %c0_67, %c0_68] : memref<2x8x32xf32, #tpu.memory_space<vmem>>, vector<2x8x32xf32>
    tpu.vector_store %arg4[%c0_66, %c0_67, %c0_68], %170 {strides = array<i32>} : memref<2x8x32xf32, #tpu.memory_space<vmem>>, vector<2x8x32xf32>,
    return
  }
}

</mosaic_0001>

<bundles_post_ra>
// kernel: encoder_layer.1
= control target key start
LH: loop header
LB: loop body
LE: loop exit
PB: predicated region body
PF: predicated region fallthrough
CT: control target
= control target key end

     0   :  { %11 = vsyncpa [#allocation3], 0  ;;  %s2840_s0 = inlined_call_operand.vmem [shape: f32[16,32], index: 0, kind: input, shape index: {}]   ;;  %s2841_s1 = inlined_call_operand.vmem [shape: f32[2,8,8], index: 1, kind: input, shape index: {}]   ;;  %s2842_s2 = inlined_call_operand.hbm [shape: f32[160,96], index: 2, kind: input, shape index: {}]   ;;  %s2843_s3 = inlined_call_operand.vmem [shape: f32[8,96], index: 3, kind: input, shape index: {}]   ;;  %s2844_s4 = inlined_call_operand.hbm [shape: f32[2,8,32], index: 4, kind: output, shape index: {0}]   ;;  %s2845_s5 = inlined_call_operand.hbm [shape: f32[2,4,8,8], index: 5, kind: output, shape index: {1}]  }
   0x1   :  { %12 = vsyncpa [#allocation4], 0 }
   0x2   :  { %13 = vsyncpa [#allocation7], 0  ;;  %s2522_s18 = smov [#allocation2]   ;;  %s2450_s22 = scalar_lea.hbm %s2842_s2, 2560 }
   0x3   :  { %s23_s19 = sshll.u32 %s2522_s18, 4  ;;  %p2451_p0 = scmp.ne.s32.totalorder %s2842_s2, %s2450_s22  ;;  %s24_s19 = int_to_ptr.vmem [resolvable:$true] %s23_s19 }
   0x4   :  { %p2454_p1 = scmp.lt.u32.totalorder %s2450_s22, %s2842_s2 }
   0x6   :  { %p2456_p2 = pnand %p2454_p1, %p2451_p0 }
   0x8   :  { %2459 = shalt.err (!%p2456_p2)
}
   0x9   :  { %s2460_s27 = scalar_lea.vmem %s24_s19, 2560  ;;  %p2465_p4 = scmp.lt.s32.totalorder %s24_s19, %s24_s19 }
   0xa   :  { %p2461_p3 = scmp.ne.s32.totalorder %s24_s19, %s2460_s27  ;;  %p2466_p5 = scmp.lt.s32.totalorder %s2460_s27, %s2460_s27 }
   0xc   :  { %p2467_p6 = por %p2466_p5, %p2465_p4 }
   0xe   :  { %p2468_p7 = pnand %p2467_p6, %p2461_p3 }
  0x10   :  { %2471 = shalt.err (!%p2468_p7)
}
  0x11   :  { %s2523_s28 = smov 128   ;;  %s2524_s29 = smov 8  }
  0x12   :  { %29 = dma.hbm_to_vmem [thread:$0]  %s2842_s2, 2560, %s24_s19, [#allocation3], %s2523_s28, %s2523_s28, %s2524_s29  }
  0x13   :  { %2516 = dma.done.wait [#allocation3], 2560  }
  0x14   :  { %2517 = vsyncadd [#allocation3], 4294964736  ;;  %vm50_vm0 = vcmask 261120   ;;  %v42_v0 = vld [vmem:[#allocation2] sm:$0xff]  ;;  %v43_v1 = vld [vmem:[#allocation2 + $0x8] sm:$0xff]  ;;  %v2525_v8 = vmov 0.0   ;;  %v46_v9 = vlaneseq }
  0x15   :  { %v44_v2 = vld [vmem:[#allocation2 + $0x10] sm:$0xff]  ;;  %v2354_v3 = vpack.c.bf16 %v43_v1, %v42_v0  ;;  %v45_v4 = vld [vmem:[#allocation2 + $0x18] sm:$0xff]  ;;  %v2588_v5 = vld [vmem:[%s2840_s0] sm:$0xff]  ;;  %2234 = vmatprep.subr.mxu0 %v2525_v8  ;;  %vm2526_vm1 = vmmov 0   ;;  %s2527_s11 = smov 96   ;;  %s2528_s12 = smov 64  }
  0x16   :  { %v2358_v6 = vpack.c.bf16 %v45_v4, %v44_v2  ;;  %2221 = vmatprep.mubr.msk.f32.mxu1 %vm50_vm0, %v2588_v5  ;;  %v2595_v7 = vld [vmem:[%s2840_s0 + $0x8] sm:$0xff]  ;;  %v2601_v10 = vshrl.u32 %v46_v9, 7  ;;  %2236 = vmatprep.mubr.msk.f32.mxu0 %vm2526_vm1, %v2525_v8  ;;  %v2611_v12 = vld [vmem:[%s2843_s3] sm:$0xff]  ;;  %s2529_s13 = smov 120   ;;  %vm135_vm2 = vcmask 64512   ;;  %s2531_s17 = smov 80  }
  0x17   :  { %2355 = vmatprep.subr.bf16.mxu1 %v2354_v3  ;;  %v2640_v21 = vld [vmem:[%s2841_s1] sm:$0xff]  ;;  %v2646_v22 = vld [vmem:[%s2841_s1 + $0x8] sm:$0xff]  ;;  %s2530_s1 = smov 88   ;;  %s2532_s18 = smov 56   ;;  %vm1952_vm5 = vcmask 523264  }
  0x18   :  { %2357 = vmatpush3.bf16.msra.mxu1 %v2354_v3  ;;  %v48_v11 = vsub.s32 0, %v2601_v10  ;;  %vm39_vm3 = vcmp.ne.f32.partialorder %v2640_v21, 0.0  ;;  %vm40_vm4 = vcmp.ne.f32.partialorder %v2646_v22, 0.0  ;;  %s2533_s19 = smov 112   ;;  %s2534_s20 = smov 48  }
  0x19   :  { %2359 = vmatprep.subr.bf16.mxu1 %v2358_v6  ;;  %s2535_s21 = smov 72   ;;  %s2536_s22 = smov 104  }
  0x1a   :  { %v49_v13 = vrot.slane %v2611_v12, %v48_v11  ;;  %s2537_s23 = smov 40   ;;  %s2538_s24 = smov [#allocation6]  }
  0x1b   :  { %s2093_s25 = sshll.u32 %s2538_s24, 4  ;;  %s2094_s25 = int_to_ptr.vmem [resolvable:$true] %s2093_s25 }
  0x1c   :  { %2361 = vmatpush3.bf16.msra.mxu1 %v2358_v6  ;;  %s2472_s26 = scalar_lea.vmem %s2094_s25, 1024  ;;  %p2477_p9 = scmp.lt.s32.totalorder %s2094_s25, %s2094_s25 }
  0x1d   :  { %2224 = vmatprep.subr.mxu1 %v2525_v8  ;;  %p2473_p8 = scmp.ne.s32.totalorder %s2094_s25, %s2472_s26  ;;  %p2478_p10 = scmp.lt.s32.totalorder %s2472_s26, %s2472_s26 }
  0x1f   :  { %2222 = vmatmul.mubr.msk.f32.vlgmr.msra.gmra.mrb[0].mxu1 %vm50_vm0, %v2595_v7  ;;  %p2479_p11 = por %p2478_p10, %p2477_p9 }
  0x20   :  { %2226 = vmatprep.mubr.msk.f32.mxu1 %vm2526_vm1, %v2525_v8 }
  0x21   :  { %p2480_p12 = pnand %p2479_p11, %p2473_p8 }
  0xf2   :  { %v2223_v14 = vpop.f32.mrb[0].mxu1 }
  0xf3   :  { %v123_v15 = vpop.f32.mrb[1].mxu1  ;;  %v2617_v17 = vadd.f32 %v2223_v14, %v49_v13 }
  0xf4   :  { %v2614_v16 = vadd.f32 %v123_v15, %v49_v13 }
  0xf6   :  { %133 = vrot.lane.b32.xlu0 %v2614_v16, %s2527_s11 }
  0xfa   :  { %211 = vrot.lane.b32.xlu0 %v2617_v17, %s2527_s11 }
  0xfe   :  { %389 = vrot.lane.b32.xlu0 %v2617_v17, %s2528_s12 }
 0x102   :  { %544 = vrot.lane.b32.xlu0 %v2617_v17, %s2529_s13 }
 0x168   :  { %v134_v18 = vpop.permute.xlu0 %133 }
 0x169   :  { %2225 = vmatpush3.xpose.msk.msra.mxu1 %vm135_vm2, %v134_v18 }
 0x16a   :  { %2229 = vmatprep.subr.mxu1 %v2525_v8 }
 0x16c   :  { %2227 = vmatmul.mubr.msk.f32.vlgmr.msra.gmra.mrb[2].mxu1 %vm135_vm2, %v2614_v16  ;;  %v212_v19 = vpop.permute.xlu0 %211 }
 0x16d   :  { %2230 = vmatpush3.xpose.msk.msra.mxu1 %vm135_vm2, %v212_v19  ;;  %2231 = vmatprep.mubr.msk.f32.mxu1 %vm2526_vm1, %v2525_v8 }
 0x16e   :  { %2239 = vmatprep.subr.mxu1 %v2525_v8 }
 0x170   :  { %2232 = vmatmul.mubr.msk.f32.vlgmr.msra.gmra.mrb[4].mxu1 %vm135_vm2, %v2617_v17  ;;  %v390_v20 = vpop.permute.xlu0 %389 }
 0x171   :  { %2240 = vmatpush3.msra.mxu1 %v390_v20  ;;  %2241 = vmatprep.mubr.msk.f32.mxu1 %vm2526_vm1, %v2525_v8 }
 0x172   :  { %2249 = vmatprep.subr.mxu1 %v2525_v8 }
 0x174   :  { %v545_v31 = vpop.permute.xlu0 %544 }
 0x23f   :  { %v206_v23 = vpop.f32.mrb[2].mxu1 }
 0x240   :  { %v287_v24 = vsel %vm39_vm3, -1e+09, %v206_v23  ;;  %v2228_v25 = vpop.f32.mrb[3].mxu1 }
 0x241   :  { %v289_v26 = vsel %vm135_vm2, %v287_v24, -inf }
 0x242   :  { %290 = vmax.xlane.f32.xlu0 %v289_v26 }
 0x243   :  { %v283_v27 = vpop.f32.mrb[4].mxu1 }
 0x244   :  { %v288_v28 = vsel %vm40_vm4, -1e+09, %v283_v27  ;;  %v2233_v29 = vpop.f32.mrb[5].mxu1 }
 0x245   :  { %v292_v30 = vsel %vm135_vm2, %v288_v28, -inf }
 0x246   :  { %293 = vmax.xlane.f32.xlu1 %v292_v30 }
 0x258   :  { %313 = vrot.lane.b32.xlu0 %v2614_v16, %s2528_s12 }
 0x25c   :  { %466 = vrot.lane.b32.xlu0 %v2614_v16, %s2529_s13 }
 0x2cf   :  { %v291_v32 = vpop.xlane.xlu0 %290 }
 0x2d0   :  { %v295_v39 = vsub.f32 %v287_v24, %v291_v32  ;;  %v465_v32 = vld [vmem:[#allocation2 + $0x20] sm:$0xff] }
 0x2d2   :  { %v297_v40 = vmul.f32 1.442695, %v295_v39 }
 0x2d3   :  { %v294_v33 = vpop.xlane.xlu1 %293  ;;  %v314_v34 = vpop.permute.xlu0 %313 }
 0x2d4   :  { %v296_v35 = vsub.f32 %v288_v28, %v294_v33  ;;  %2235 = vmatpush3.msra.mxu0 %v314_v34 }
 0x2d5   :  { %2244 = vmatprep.subr.mxu0 %v2525_v8 }
 0x2d6   :  { %v299_v36 = vmul.f32 1.442695, %v296_v35 }
 0x2d7   :  { %v467_v51 = vpop.permute.xlu0 %466 }
 0x2d8   :  { %2410 = vpow2.f32 %v299_v36 }
 0x2d9   :  { %2412 = vpow2.f32 %v297_v40 }
 0x2e2   :  { %v2411_v37 = vpop.eup %2410 }
 0x2e3   :  { %v304_v38 = vsel %vm135_vm2, %v2411_v37, 0.0  ;;  %v2413_v41 = vpop.eup %2412 }
 0x2e4   :  { %305 = vadd.xlane.f32.xlu1 %v304_v38  ;;  %v301_v42 = vsel %vm135_vm2, %v2413_v41, 0.0 }
 0x2f5   :  { %546 = vrot.lane.b32.xlu1 %v2617_v17, %s2530_s1 }
 0x319   :  { %302 = vadd.xlane.f32.xlu1 %v301_v42 }
 0x32a   :  { %468 = vrot.lane.b32.xlu1 %v2614_v16, %s2530_s1 }
 0x32e   :  { %966 = vrot.lane.b32.xlu1 %v2614_v16, %s2531_s17 }
 0x371   :  { %v306_v43 = vpop.xlane.xlu1 %305 }
 0x372   :  { %2414 = vrcp.f32 %v306_v43 }
 0x375   :  { %v547_v46 = vpop.permute.xlu1 %546 }
 0x37c   :  { %v2415_v44 = vpop.eup %2414 }
 0x37d   :  { %v310_v45 = vmul.f32 %v2415_v44, %v2411_v37 }
 0x37f   :  { %312 = vst.msk [vmem:[#allocation6 + $0x20] sm:$0xff] %vm135_vm2, %v310_v45  ;;  %2242 = vmatmul.mubr.msk.f32.vlgmr.msra.gmra.mrb[6].mxu1 %vm135_vm2, %v310_v45 }
 0x380   :  { %2250 = vmatpush3.xpose.msk.msra.mxu1 %vm135_vm2, %v547_v46  ;;  %2251 = vmatprep.mubr.msk.f32.mxu1 %vm2526_vm1, %v2525_v8 }
 0x381   :  { %2259 = vmatprep.subr.mxu1 %v2525_v8 }
 0x383   :  { %2252 = vmatmul.mubr.msk.f32.vlgmr.msra.gmra.mrb[8].mxu1 %vm135_vm2, %v545_v31  ;;  %v801_v31 = vld [vmem:[#allocation2 + $0x28] sm:$0xff] }
 0x384   :  { %2261 = vmatprep.mubr.msk.f32.mxu1 %vm2526_vm1, %v2525_v8 }
 0x3a6   :  { %v303_v47 = vpop.xlane.xlu1 %302 }
 0x3a7   :  { %2416 = vrcp.f32 %v303_v47 }
 0x3aa   :  { %v469_v50 = vpop.permute.xlu1 %468 }
 0x3ae   :  { %v967_v23 = vpop.permute.xlu1 %966 }
 0x3b1   :  { %v2417_v48 = vpop.eup %2416 }
 0x3b2   :  { %v308_v49 = vmul.f32 %v2417_v48, %v2413_v41 }
 0x3b4   :  { %311 = vst.msk [vmem:[#allocation6] sm:$0xff] %vm135_vm2, %v308_v49  ;;  %2237 = vmatmul.mubr.msk.f32.vlgmr.msra.gmra.mrb[0].mxu0 %vm135_vm2, %v308_v49 }
 0x3b5   :  { %2245 = vmatpush3.xpose.msk.msra.mxu0 %vm135_vm2, %v469_v50  ;;  %2246 = vmatprep.mubr.msk.f32.mxu0 %vm2526_vm1, %v2525_v8 }
 0x3b6   :  { %2254 = vmatprep.subr.mxu0 %v2525_v8 }
 0x3b8   :  { %2247 = vmatmul.mubr.msk.f32.vlgmr.msra.gmra.mrb[2].mxu0 %vm135_vm2, %v467_v51 }
 0x3b9   :  { %2256 = vmatprep.mubr.msk.f32.mxu0 %vm2526_vm1, %v2525_v8 }
 0x452   :  { %v2684_v52 = vpop.f32.mrb[6].mxu1 }
 0x453   :  { %v2243_v53 = vpop.f32.mrb[7].mxu1 }
 0x456   :  { %v618_v54 = vpop.f32.mrb[8].mxu1 }
 0x457   :  { %v623_v55 = vsel %vm40_vm4, -1e+09, %v618_v54  ;;  %v2253_v56 = vpop.f32.mrb[9].mxu1 }
 0x458   :  { %v627_v57 = vsel %vm135_vm2, %v623_v55, -inf }
 0x459   :  { %628 = vmax.xlane.f32.xlu0 %v627_v57 }
 0x46f   :  { %725 = vrot.lane.b32.xlu0 %v2617_v17, %s2532_s18 }
 0x473   :  { %964 = vrot.lane.b32.xlu0 %v2614_v16, %s2533_s19 }
 0x477   :  { %1044 = vrot.lane.b32.xlu0 %v2617_v17, %s2531_s17 }
 0x487   :  { %v2693_v58 = vpop.f32.mrb[0].mxu0 }
 0x488   :  { %v2238_v59 = vpop.f32.mrb[1].mxu0 }
 0x48b   :  { %v540_v60 = vpop.f32.mrb[2].mxu0 }
 0x48c   :  { %v2248_v61 = vpop.f32.mrb[3].mxu0  ;;  %v622_v62 = vsel %vm39_vm3, -1e+09, %v540_v60 }
 0x48d   :  { %v624_v63 = vsel %vm135_vm2, %v622_v62, -inf }
 0x496   :  { %625 = vmax.xlane.f32.xlu0 %v624_v63 }
 0x4ac   :  { %649 = vrot.lane.b32.xlu0 %v2614_v16, %s2532_s18 }
 0x4b0   :  { %1147 = vrot.lane.b32.xlu0 %v2614_v16, %s2534_s20 }
 0x4b4   :  { %1385 = vrot.lane.b32.xlu0 %v2614_v16, %s2535_s21 }
 0x4b8   :  { %1463 = vrot.lane.b32.xlu0 %v2617_v17, %s2535_s21 }
 0x4bc   :  { %1383 = vrot.lane.b32.xlu0 %v2614_v16, %s2536_s22 }
 0x4c0   :  { %1461 = vrot.lane.b32.xlu0 %v2617_v17, %s2536_s22 }
 0x4e6   :  { %v629_v0 = vpop.xlane.xlu0 %628 }
 0x4e7   :  { %v631_v1 = vsub.f32 %v623_v55, %v629_v0 }
 0x4e9   :  { %v634_v2 = vmul.f32 1.442695, %v631_v1 }
 0x4ea   :  { %v726_v3 = vpop.permute.xlu0 %725 }
 0x4eb   :  { %2418 = vpow2.f32 %v634_v2  ;;  %2260 = vmatpush3.msra.mxu1 %v726_v3 }
 0x4ec   :  { %2274 = vmatprep.subr.mxu1 %v2525_v8 }
 0x4ee   :  { %v965_v9 = vpop.permute.xlu0 %964 }
 0x4f2   :  { %v1045_v11 = vpop.permute.xlu0 %1044 }
 0x4f5   :  { %v2419_v4 = vpop.eup %2418 }
 0x4f6   :  { %v639_v6 = vsel %vm135_vm2, %v2419_v4, 0.0 }
 0x4f7   :  { %640 = vadd.xlane.f32.xlu1 %v639_v6 }
 0x508   :  { %1042 = vrot.lane.b32.xlu1 %v2617_v17, %s2533_s19 }
 0x523   :  { %v626_v13 = vpop.xlane.xlu0 %625 }
 0x524   :  { %v630_v14 = vsub.f32 %v622_v62, %v626_v13 }
 0x526   :  { %v632_v15 = vmul.f32 1.442695, %v630_v14 }
 0x527   :  { %v650_v18 = vpop.permute.xlu0 %649 }
 0x528   :  { %2420 = vpow2.f32 %v632_v15  ;;  %2255 = vmatpush3.msra.mxu0 %v650_v18 }
 0x529   :  { %2264 = vmatprep.subr.mxu0 %v801_v31 }
 0x52b   :  { %v1148_v45 = vpop.permute.xlu0 %1147 }
 0x52f   :  { %v1386_v60 = vpop.permute.xlu0 %1385 }
 0x532   :  { %v2421_v19 = vpop.eup %2420 }
 0x533   :  { %v636_v20 = vsel %vm135_vm2, %v2421_v19, 0.0  ;;  %v1464_v0 = vpop.permute.xlu0 %1463 }
 0x534   :  { %637 = vadd.xlane.f32.xlu1 %v636_v20 }
 0x537   :  { %v1384_v2 = vpop.permute.xlu0 %1383 }
 0x584   :  { %v641_v24 = vpop.xlane.xlu1 %640 }
 0x585   :  { %2422 = vrcp.f32 %v641_v24 }
 0x588   :  { %v1043_v27 = vpop.permute.xlu1 %1042 }
 0x58f   :  { %v2423_v25 = vpop.eup %2422 }
 0x590   :  { %v645_v26 = vmul.f32 %v2423_v25, %v2419_v4 }
 0x592   :  { %648 = vst.msk [vmem:[#allocation6 + $0x28] sm:$0xff] %vm135_vm2, %v645_v26  ;;  %2262 = vmatmul.mubr.msk.f32.vlgmr.msra.gmra.mrb[10].mxu1 %vm135_vm2, %v645_v26 }
 0x593   :  { %2275 = vmatpush3.xpose.msk.msra.mxu1 %vm135_vm2, %v967_v23  ;;  %2276 = vmatprep.mubr.msk.f32.mxu1 %vm2526_vm1, %v2525_v8 }
 0x594   :  { %2279 = vmatprep.subr.mxu1 %v2525_v8 }
 0x596   :  { %2277 = vmatmul.mubr.msk.f32.vlgmr.msra.gmra.mrb[12].mxu1 %vm135_vm2, %v965_v9 }
 0x597   :  { %2280 = vmatpush3.xpose.msk.msra.mxu1 %vm135_vm2, %v1045_v11  ;;  %2281 = vmatprep.mubr.msk.f32.mxu1 %vm2526_vm1, %v2525_v8  ;;  %v1462_v11 = vpop.permute.xlu0 %1461 }
 0x598   :  { %2289 = vmatprep.subr.mxu1 %v2525_v8 }
 0x59a   :  { %2282 = vmatmul.mubr.msk.f32.vlgmr.msra.gmra.mrb[14].mxu1 %vm135_vm2, %v1043_v27 }
 0x59b   :  { %2291 = vmatprep.mubr.msk.f32.mxu1 %vm2526_vm1, %v2525_v8 }
 0x5c1   :  { %v638_v28 = vpop.xlane.xlu1 %637 }
 0x5c2   :  { %2424 = vrcp.f32 %v638_v28 }
 0x5cc   :  { %v2425_v29 = vpop.eup %2424 }
 0x5cd   :  { %v643_v30 = vmul.f32 %v2425_v29, %v2421_v19 }
 0x5cf   :  { %647 = vst.msk [vmem:[#allocation6 + $0x8] sm:$0xff] %vm135_vm2, %v643_v30  ;;  %2257 = vmatmul.mubr.msk.f32.vlgmr.msra.gmra.mrb[4].mxu0 %vm135_vm2, %v643_v30 }
 0x5d0   :  { %2265 = vmatpush3.msra.mxu0 %v801_v31 }
 0x5d1   :  { %2269 = vmatprep.subr.mxu0 %v465_v32 }
 0x665   :  { %v797_v33 = vpop.f32.mrb[10].mxu1 }
 0x666   :  { %v2263_v34 = vpop.f32.mrb[11].mxu1 }
 0x669   :  { %v1038_v35 = vpop.f32.mrb[12].mxu1 }
 0x66a   :  { %v1120_v36 = vsel %vm39_vm3, -1e+09, %v1038_v35  ;;  %v2278_v37 = vpop.f32.mrb[13].mxu1 }
 0x66b   :  { %v1122_v38 = vsel %vm135_vm2, %v1120_v36, -inf }
 0x66c   :  { %1123 = vmax.xlane.f32.xlu1 %v1122_v38 }
 0x66d   :  { %v1116_v39 = vpop.f32.mrb[14].mxu1 }
 0x66e   :  { %v1121_v40 = vsel %vm40_vm4, -1e+09, %v1116_v39  ;;  %v2283_v41 = vpop.f32.mrb[15].mxu1 }
 0x66f   :  { %v1125_v42 = vsel %vm135_vm2, %v1121_v40, -inf }
 0x670   :  { %1126 = vmax.xlane.f32.xlu1 %v1125_v42 }
 0x6a2   :  { %v721_v43 = vpop.f32.mrb[4].mxu0 }
 0x6a3   :  { %v2258_v44 = vpop.f32.mrb[5].mxu0  ;;  %2266 = vmatprep.mubr.msk.f32.mxu0 %vm135_vm2, %v721_v43 }
 0x6a4   :  { %2267 = vmatmul.mubr.msk.f32.vlgmr.msra.gmra.mrb[6].mxu0 %vm135_vm2, %v797_v33 }
 0x6a5   :  { %2271 = vmatprep.mubr.msk.f32.mxu0 %vm135_vm2, %v2693_v58  ;;  %2270 = vmatpush3.msra.mxu0 %v465_v32 }
 0x6a6   :  { %2284 = vmatprep.subr.mxu0 %v2525_v8 }
 0x6ac   :  { %2272 = vmatmul.mubr.msk.f32.vlgmr.msra.gmra.mrb[6].mxu0 %vm135_vm2, %v2684_v52  ;;  %v1299_v52 = vld [vmem:[#allocation2 + $0x30] sm:$0xff] }
 0x6ad   :  { %2285 = vmatpush3.msra.mxu0 %v1148_v45  ;;  %2286 = vmatprep.mubr.msk.f32.mxu0 %vm2526_vm1, %v2525_v8 }
 0x6ae   :  { %2294 = vmatprep.subr.mxu0 %v1299_v52 }
 0x6f9   :  { %v1124_v46 = vpop.xlane.xlu1 %1123 }
 0x6fa   :  { %v1128_v47 = vsub.f32 %v1120_v36, %v1124_v46  ;;  %v1718_v36 = vld [vmem:[#allocation2 + $0x38] sm:$0xff] }
 0x6fc   :  { %v1130_v48 = vmul.f32 1.442695, %v1128_v47 }
 0x6fd   :  { %v1127_v49 = vpop.xlane.xlu1 %1126 }
 0x6fe   :  { %2426 = vpow2.f32 %v1130_v48  ;;  %v1129_v50 = vsub.f32 %v1121_v40, %v1127_v49 }
 0x700   :  { %v1132_v51 = vmul.f32 1.442695, %v1129_v50 }
 0x702   :  { %2428 = vpow2.f32 %v1132_v51 }
 0x708   :  { %v2427_v53 = vpop.eup %2426 }
 0x709   :  { %v1134_v54 = vsel %vm135_vm2, %v2427_v53, 0.0 }
 0x70a   :  { %1135 = vadd.xlane.f32.xlu1 %v1134_v54 }
 0x70c   :  { %v2429_v55 = vpop.eup %2428 }
 0x70d   :  { %v1137_v56 = vsel %vm135_vm2, %v2429_v55, 0.0 }
 0x70e   :  { %1138 = vadd.xlane.f32.xlu1 %v1137_v56 }
 0x71f   :  { %1223 = vrot.lane.b32.xlu1 %v2617_v17, %s2534_s20 }
 0x797   :  { %v1136_v57 = vpop.xlane.xlu1 %1135 }
 0x798   :  { %2430 = vrcp.f32 %v1136_v57 }
 0x79b   :  { %v1139_v58 = vpop.xlane.xlu1 %1138 }
 0x79c   :  { %2432 = vrcp.f32 %v1139_v58 }
 0x79f   :  { %v1224_v59 = vpop.permute.xlu1 %1223 }
 0x7a0   :  { %2290 = vmatpush3.msra.mxu1 %v1224_v59 }
 0x7a1   :  { %2299 = vmatprep.subr.mxu1 %v2525_v8 }
 0x7a2   :  { %v2431_v61 = vpop.eup %2430 }
 0x7a3   :  { %v1141_v62 = vmul.f32 %v2431_v61, %v2427_v53 }
 0x7a5   :  { %1145 = vst.msk [vmem:[#allocation6 + $0x10] sm:$0xff] %vm135_vm2, %v1141_v62  ;;  %2287 = vmatmul.mubr.msk.f32.vlgmr.msra.gmra.mrb[8].mxu0 %vm135_vm2, %v1141_v62  ;;  %v1850_v62 = vld [vmem:[#allocation2 + $0x48] sm:$0xff] }
 0x7a6   :  { %v2433_v63 = vpop.eup %2432  ;;  %2295 = vmatpush3.msra.mxu0 %v1299_v52 }
 0x7a7   :  { %v1143_v1 = vmul.f32 %v2433_v63, %v2429_v55  ;;  %2304 = vmatprep.subr.mxu0 %v2525_v8 }
 0x7a9   :  { %1146 = vst.msk [vmem:[#allocation6 + $0x30] sm:$0xff] %vm135_vm2, %v1143_v1  ;;  %2292 = vmatmul.mubr.msk.f32.vlgmr.msra.gmra.mrb[16].mxu1 %vm135_vm2, %v1143_v1  ;;  %v1852_v1 = vld [vmem:[#allocation2 + $0x58] sm:$0xff] }
 0x7aa   :  { %2300 = vmatpush3.xpose.msk.msra.mxu1 %vm135_vm2, %v1386_v60  ;;  %2301 = vmatprep.mubr.msk.f32.mxu1 %vm2526_vm1, %v2525_v8 }
 0x7ab   :  { %2309 = vmatprep.subr.mxu1 %v2525_v8 }
 0x7ad   :  { %2302 = vmatmul.mubr.msk.f32.vlgmr.msra.gmra.mrb[18].mxu1 %vm135_vm2, %v1384_v2 }
 0x7ae   :  { %2311 = vmatprep.mubr.msk.f32.mxu1 %vm2526_vm1, %v2525_v8 }
 0x878   :  { %v1219_v3 = vpop.f32.mrb[8].mxu0 }
 0x879   :  { %v2288_v4 = vpop.f32.mrb[9].mxu0  ;;  %2296 = vmatprep.mubr.msk.f32.mxu0 %vm135_vm2, %v1219_v3  ;;  %v1853_v3 = vld [vmem:[#allocation2 + $0x60] sm:$0xff] }
 0x87a   :  { %v1854_v4 = vld [vmem:[#allocation2 + $0x68] sm:$0xff] }
 0x87c   :  { %v1295_v6 = vpop.f32.mrb[16].mxu1 }
 0x87d   :  { %v2293_v9 = vpop.f32.mrb[17].mxu1  ;;  %2297 = vmatmul.mubr.msk.f32.vlgmr.msra.gmra.mrb[6].mxu0 %vm135_vm2, %v1295_v6  ;;  %v1855_v6 = vld [vmem:[#allocation2 + $0x70] sm:$0xff] }
 0x87e   :  { %2305 = vmatpush3.xpose.msk.msra.mxu0 %vm135_vm2, %v1464_v0  ;;  %2306 = vmatprep.mubr.msk.f32.mxu0 %vm2526_vm1, %v2525_v8  ;;  %v1851_v0 = vld [vmem:[#allocation2 + $0x50] sm:$0xff]  ;;  %v2370_v9 = vpack.c.bf16 %v1854_v4, %v1853_v3 }
 0x87f   :  { %2314 = vmatprep.subr.mxu0 %v2525_v8  ;;  %v2366_v2 = vpack.c.bf16 %v1852_v1, %v1851_v0 }
 0x880   :  { %v1457_v13 = vpop.f32.mrb[18].mxu1 }
 0x881   :  { %v1539_v14 = vsel %vm39_vm3, -1e+09, %v1457_v13  ;;  %v2303_v15 = vpop.f32.mrb[19].mxu1  ;;  %2307 = vmatmul.mubr.msk.f32.vlgmr.msra.gmra.mrb[10].mxu0 %vm135_vm2, %v1462_v11  ;;  %v1856_v11 = vld [vmem:[#allocation2 + $0x78] sm:$0xff] }
 0x882   :  { %v1541_v18 = vsel %vm135_vm2, %v1539_v14, -inf  ;;  %2316 = vmatprep.mubr.msk.f32.mxu0 %vm2526_vm1, %v2525_v8  ;;  %v2374_v13 = vpack.c.bf16 %v1856_v11, %v1855_v6  ;;  %v1858_v15 = vld [vmem:[#allocation2 + $0x88] sm:$0xff] }
 0x883   :  { %1542 = vmax.xlane.f32.xlu1 %v1541_v18 }
 0x910   :  { %v1543_v19 = vpop.xlane.xlu1 %1542 }
 0x911   :  { %v1547_v20 = vsub.f32 %v1539_v14, %v1543_v19  ;;  %v1857_v14 = vld [vmem:[#allocation2 + $0x80] sm:$0xff] }
 0x912   :  { %v2378_v18 = vpack.c.bf16 %v1858_v15, %v1857_v14 }
 0x913   :  { %v1549_v23 = vmul.f32 1.442695, %v1547_v20 }
 0x915   :  { %2434 = vpow2.f32 %v1549_v23 }
 0x91f   :  { %v2435_v27 = vpop.eup %2434 }
 0x920   :  { %v1553_v28 = vsel %vm135_vm2, %v2435_v27, 0.0 }
 0x954   :  { %v1535_v24 = vpop.f32.mrb[10].mxu0 }
 0x955   :  { %v1540_v25 = vsel %vm40_vm4, -1e+09, %v1535_v24  ;;  %v2308_v26 = vpop.f32.mrb[11].mxu0 }
 0x956   :  { %v1544_v21 = vsel %vm135_vm2, %v1540_v25, -inf }
 0x957   :  { %1545 = vmax.xlane.f32.xlu0 %v1544_v21  ;;  %v1839_v21 = vsub.s32 2, %v2601_v10 }
 0x95b   :  { %1554 = vadd.xlane.f32.xlu0 %v1553_v28  ;;  %v1840_v28 = vrot.slane %v2611_v12, %v1839_v21 }
 0x971   :  { %1566 = vrot.lane.b32.xlu0 %v2614_v16, %s2537_s23 }
 0x9e4   :  { %v1546_v8 = vpop.xlane.xlu0 %1545 }
 0x9e5   :  { %v1548_v29 = vsub.f32 %v1540_v25, %v1546_v8 }
 0x9e7   :  { %v1551_v30 = vmul.f32 1.442695, %v1548_v29 }
 0x9e8   :  { %v1555_v31 = vpop.xlane.xlu0 %1554 }
 0x9e9   :  { %2436 = vpow2.f32 %v1551_v30 }
 0x9ea   :  { %2438 = vrcp.f32 %v1555_v31 }
 0x9ec   :  { %v1567_v32 = vpop.permute.xlu0 %1566 }
 0x9ed   :  { %2310 = vmatpush3.msra.mxu1 %v1567_v32 }
 0x9f3   :  { %v2437_v22 = vpop.eup %2436 }
 0x9f4   :  { %v2439_v33 = vpop.eup %2438  ;;  %v1556_v34 = vsel %vm135_vm2, %v2437_v22, 0.0 }
 0x9f5   :  { %v1560_v35 = vmul.f32 %v2439_v33, %v2435_v27  ;;  %1557 = vadd.xlane.f32.xlu1 %v1556_v34  ;;  %v1845_v27 = vsub.s32 3, %v2601_v10 }
 0x9f7   :  { %1564 = vst.msk [vmem:[#allocation6 + $0x18] sm:$0xff] %vm135_vm2, %v1560_v35  ;;  %2312 = vmatmul.mubr.msk.f32.vlgmr.msra.gmra.mrb[20].mxu1 %vm135_vm2, %v1560_v35  ;;  %v1846_v32 = vrot.slane %v2611_v12, %v1845_v27 }
 0xa06   :  { %1642 = vrot.lane.b32.xlu1 %v2617_v17, %s2537_s23  ;;  %v1804_v17 = vsub.s32 1, %v2601_v10 }
 0xa08   :  { %v1805_v44 = vrot.slane %v2611_v12, %v1804_v17 }
 0xa82   :  { %v1558_v16 = vpop.xlane.xlu1 %1557 }
 0xa83   :  { %2440 = vrcp.f32 %v1558_v16  ;;  %v1859_v16 = vld [vmem:[#allocation2 + $0x90] sm:$0xff] }
 0xa86   :  { %v1643_v37 = vpop.permute.xlu1 %1642 }
 0xa87   :  { %2315 = vmatpush3.msra.mxu0 %v1643_v37 }
 0xa88   :  { %2319 = vmatprep.subr.mxu0 %v1718_v36 }
 0xa8d   :  { %v2441_v38 = vpop.eup %2440 }
 0xa8e   :  { %v1562_v39 = vmul.f32 %v2441_v38, %v2437_v22  ;;  %v1863_v38 = vsub.s32 4, %v2601_v10 }
 0xa90   :  { %1565 = vst.msk [vmem:[#allocation6 + $0x38] sm:$0xff] %vm135_vm2, %v1562_v39  ;;  %2317 = vmatmul.mubr.msk.f32.vlgmr.msra.gmra.mrb[12].mxu0 %vm135_vm2, %v1562_v39  ;;  %v1864_v39 = vrot.slane %v2611_v12, %v1863_v38 }
 0xa91   :  { %2320 = vmatpush3.msra.mxu0 %v1718_v36  ;;  %v1860_v36 = vld [vmem:[#allocation2 + $0x98] sm:$0xff] }
 0xa92   :  { %2371 = vmatprep.subr.bf16.mxu0 %v2370_v9  ;;  %v2382_v37 = vpack.c.bf16 %v1860_v36, %v1859_v16 }
 0xaca   :  { %v1638_v40 = vpop.f32.mrb[20].mxu1 }
 0xacb   :  { %v2313_v41 = vpop.f32.mrb[21].mxu1  ;;  %2321 = vmatprep.mubr.msk.f32.mxu0 %vm135_vm2, %v1638_v40 }
 0xb63   :  { %v1714_v42 = vpop.f32.mrb[12].mxu0 }
 0xb64   :  { %v2318_v43 = vpop.f32.mrb[13].mxu0  ;;  %2322 = vmatmul.mubr.msk.f32.vlgmr.msra.gmra.mrb[6].mxu0 %vm135_vm2, %v1714_v42 }
 0xb65   :  { %2373 = vmatpush3.bf16.msra.mxu0 %v2370_v9 }
 0xb66   :  { %2375 = vmatprep.subr.bf16.mxu0 %v2374_v13 }
 0xb69   :  { %2377 = vmatpush3.bf16.msra.mxu0 %v2374_v13 }
 0xb6a   :  { %2379 = vmatprep.subr.bf16.mxu0 %v2378_v18 }
 0xb6d   :  { %2381 = vmatpush3.bf16.msra.mxu0 %v2378_v18 }
 0xb6e   :  { %2383 = vmatprep.subr.bf16.mxu0 %v2382_v37 }
 0xb71   :  { %2385 = vmatpush3.bf16.msra.mxu0 %v2382_v37 }
 0xc37   :  { %v2323_v45 = vpop.f32.mrb[6].mxu0 }
 0xc38   :  { %v1807_v46 = vadd.f32 %v2323_v45, %v1805_v44  ;;  %v1791_v47 = vpop.f32.mrb[7].mxu0  ;;  %v1950_v45 = vsub.s32 5, %v2601_v10 }
 0xc39   :  { %v1806_v48 = vadd.f32 %v1805_v44, %v1791_v47 }
 0xc3a   :  { %v1809_v49 = vadd.f32 %v1807_v46, %v2595_v7  ;;  %v1951_v46 = vrot.slane %v2611_v12, %v1950_v45 }
 0xc3b   :  { %v1808_v50 = vadd.f32 %v1806_v48, %v2588_v5  ;;  %v1849_v5 = vld [vmem:[#allocation2 + $0x40] sm:$0xff] }
 0xc3c   :  { %v1813_v51 = vsel %vm50_vm0, %v1809_v49, 0.0  ;;  %v2362_v63 = vpack.c.bf16 %v1850_v62, %v1849_v5 }
 0xc3d   :  { %1814 = vadd.xlane.f32.xlu0 %v1813_v51  ;;  %v1810_v53 = vsel %vm50_vm0, %v1808_v50, 0.0 }
 0xc3e   :  { %1811 = vadd.xlane.f32.xlu1 %v1810_v53  ;;  %2363 = vmatprep.subr.bf16.mxu1 %v2362_v63 }
 0xc3f   :  { %2365 = vmatpush3.bf16.msra.mxu1 %v2362_v63 }
 0xc40   :  { %2367 = vmatprep.subr.bf16.mxu1 %v2366_v2 }
 0xc43   :  { %2369 = vmatpush3.bf16.msra.mxu1 %v2366_v2 }
 0xcca   :  { %v1815_v54 = vpop.xlane.xlu0 %1814 }
 0xccb   :  { %v1818_v55 = vmul.f32 0.03125, %v1815_v54  ;;  %v1812_v56 = vpop.xlane.xlu1 %1811 }
 0xccc   :  { %v1817_v52 = vmul.f32 0.03125, %v1812_v56 }
 0xccd   :  { %v1820_v57 = vsub.f32 %v1809_v49, %v1818_v55 }
 0xcce   :  { %v1819_v58 = vsub.f32 %v1808_v50, %v1817_v52 }
 0xccf   :  { %v1822_v59 = vmul.f32 %v1820_v57, %v1820_v57 }
 0xcd0   :  { %v1821_v60 = vmul.f32 %v1819_v58, %v1819_v58 }
 0xcd1   :  { %v1826_v61 = vsel %vm50_vm0, %v1822_v59, 0.0 }
 0xcd2   :  { %1827 = vadd.xlane.f32.xlu1 %v1826_v61  ;;  %v1823_v7 = vsel %vm50_vm0, %v1821_v60, 0.0 }
 0xcd3   :  { %1824 = vadd.xlane.f32.xlu0 %v1823_v7 }
 0xd5f   :  { %v1828_v19 = vpop.xlane.xlu1 %1827 }
 0xd60   :  { %v1830_v20 = vmul.f32 0.03125, %v1828_v19  ;;  %v1825_v23 = vpop.xlane.xlu0 %1824 }
 0xd61   :  { %v1829_v24 = vmul.f32 0.03125, %v1825_v23 }
 0xd62   :  { %v1832_v25 = vadd.f32 1e-05, %v1830_v20 }
 0xd63   :  { %v1831_v26 = vadd.f32 1e-05, %v1829_v24 }
 0xd64   :  { %2442 = vrsqrt.f32 %v1832_v25 }
 0xd65   :  { %2444 = vrsqrt.f32 %v1831_v26 }
 0xd6e   :  { %v2443_v8 = vpop.eup %2442 }
 0xd6f   :  { %v2445_v29 = vpop.eup %2444  ;;  %v1836_v30 = vmul.f32 %v2443_v8, %v1820_v57 }
 0xd70   :  { %v1835_v31 = vmul.f32 %v2445_v29, %v1819_v58 }
 0xd71   :  { %v1842_v22 = vmul.f32 %v1840_v28, %v1836_v30 }
 0xd72   :  { %v1841_v33 = vmul.f32 %v1840_v28, %v1835_v31 }
 0xd73   :  { %v1848_v35 = vadd.f32 %v1846_v32, %v1842_v22 }
 0xd74   :  { %v1847_v34 = vadd.f32 %v1846_v32, %v1841_v33 }
 0xd76   :  { %2332 = vmatprep.mubr.msk.f32.mxu1 %vm50_vm0, %v1847_v34 }
 0xd77   :  { %2333 = vmatmul.mubr.msk.f32.vlgmr.msra.gmra.mrb[22].mxu1 %vm50_vm0, %v1848_v35 }
 0xe4a   :  { %v2334_v40 = vpop.f32.mrb[22].mxu1 }
 0xe4b   :  { %v1943_v41 = vadd.f32 %v2334_v40, %v1864_v39  ;;  %v1937_v42 = vpop.f32.mrb[23].mxu1 }
 0xe4c   :  { %v1938_v43 = vadd.f32 %v1937_v42, %v1864_v39 }
 0xe4d   :  { %v1947_v44 = vmax.f32 %v1943_v41, 0.0 }
 0xe4e   :  { %v1946_v17 = vmax.f32 %v1938_v43, 0.0 }
 0xe50   :  { %2351 = vmatprep.mubr.msk.f32.mxu0 %vm1952_vm5, %v1946_v17 }
 0xe51   :  { %2352 = vmatmul.mubr.msk.f32.vlgmr.msra.gmra.mrb[14].mxu0 %vm1952_vm5, %v1947_v44 }
 0xf24   :  { %v2353_v47 = vpop.f32.mrb[14].mxu0 }
 0xf25   :  { %v2031_v48 = vadd.f32 %v2353_v47, %v1951_v46  ;;  %v2025_v49 = vpop.f32.mrb[15].mxu0 }
 0xf26   :  { %v2026_v50 = vadd.f32 %v2025_v49, %v1951_v46 }
 0xf27   :  { %v2035_v51 = vadd.f32 %v2031_v48, %v1848_v35 }
 0xf28   :  { %v2034_v53 = vadd.f32 %v2026_v50, %v1847_v34 }
 0xf29   :  { %v2039_v54 = vsel %vm50_vm0, %v2035_v51, 0.0 }
 0xf2a   :  { %2040 = vadd.xlane.f32.xlu1 %v2039_v54  ;;  %v2036_v55 = vsel %vm50_vm0, %v2034_v53, 0.0 }
 0xf2b   :  { %2037 = vadd.xlane.f32.xlu0 %v2036_v55 }
 0xfb7   :  { %v2041_v56 = vpop.xlane.xlu1 %2040 }
 0xfb8   :  { %v2043_v52 = vmul.f32 0.03125, %v2041_v56  ;;  %v2038_v57 = vpop.xlane.xlu0 %2037 }
 0xfb9   :  { %v2042_v58 = vmul.f32 0.03125, %v2038_v57 }
 0xfba   :  { %v2045_v59 = vsub.f32 %v2035_v51, %v2043_v52 }
 0xfbb   :  { %v2044_v60 = vsub.f32 %v2034_v53, %v2042_v58 }
 0xfbc   :  { %v2047_v61 = vmul.f32 %v2045_v59, %v2045_v59 }
 0xfbd   :  { %v2046_v7 = vmul.f32 %v2044_v60, %v2044_v60 }
 0xfbe   :  { %v2051_v5 = vsel %vm50_vm0, %v2047_v61, 0.0 }
 0xfbf   :  { %2052 = vadd.xlane.f32.xlu1 %v2051_v5  ;;  %v2048_v62 = vsel %vm50_vm0, %v2046_v7, 0.0 }
 0xfc0   :  { %2049 = vadd.xlane.f32.xlu0 %v2048_v62 }
 0xfc1   :  { %2483 = shalt.err (!%p2480_p12)
}
 0xfc2   :  { %s2484_s6 = scalar_lea.hbm %s2845_s5, 1024 }
 0xfc3   :  { %p2485_p13 = scmp.ne.s32.totalorder %s2845_s5, %s2484_s6  ;;  %p2488_p0 = scmp.lt.u32.totalorder %s2484_s6, %s2845_s5 }
 0xfc5   :  { %p2490_p1 = pnand %p2488_p0, %p2485_p13 }
 0xfc7   :  { %2493 = shalt.err (!%p2490_p1)
}
 0xfc8   :  { %2099 = dma.vmem_to_hbm [thread:$0]  %s2094_s25, 1024, %s2845_s5, [#allocation7], %s2523_s28, %s2523_s28, %s2524_s29   ;;  %v2064_v6 = vsub.s32 6, %v2601_v10  ;;  %v2070_v9 = vsub.s32 7, %v2601_v10 }
 0xfc9   :  { %s2539_s5 = smov [#allocation5]  }
 0xfca   :  { %v2065_v11 = vrot.slane %v2611_v12, %v2064_v6  ;;  %v2071_v18 = vrot.slane %v2611_v12, %v2070_v9  ;;  %s2081_s11 = sshll.u32 %s2539_s5, 4  ;;  %s2082_s11 = int_to_ptr.vmem [resolvable:$true] %s2081_s11 }
 0xfcb   :  { %s2494_s12 = scalar_lea.vmem %s2082_s11, 256  ;;  %p2499_p3 = scmp.lt.s32.totalorder %s2082_s11, %s2082_s11 }
 0xfcc   :  { %p2495_p2 = scmp.ne.s32.totalorder %s2082_s11, %s2494_s12  ;;  %p2500_p4 = scmp.lt.s32.totalorder %s2494_s12, %s2494_s12 }
 0xfce   :  { %p2501_p5 = por %p2500_p4, %p2499_p3 }
 0xfd0   :  { %p2502_p6 = pnand %p2501_p5, %p2495_p2 }
0x104c   :  { %v2053_v63 = vpop.xlane.xlu1 %2052 }
0x104d   :  { %v2055_v0 = vmul.f32 0.03125, %v2053_v63  ;;  %v2050_v1 = vpop.xlane.xlu0 %2049 }
0x104e   :  { %v2054_v2 = vmul.f32 0.03125, %v2050_v1 }
0x104f   :  { %v2057_v3 = vadd.f32 1e-05, %v2055_v0 }
0x1050   :  { %v2056_v4 = vadd.f32 1e-05, %v2054_v2 }
0x1051   :  { %2446 = vrsqrt.f32 %v2057_v3 }
0x1052   :  { %2448 = vrsqrt.f32 %v2056_v4 }
0x105b   :  { %v2447_v13 = vpop.eup %2446 }
0x105c   :  { %v2449_v14 = vpop.eup %2448  ;;  %v2061_v15 = vmul.f32 %v2447_v13, %v2045_v59 }
0x105d   :  { %v2060_v19 = vmul.f32 %v2449_v14, %v2044_v60 }
0x105e   :  { %v2067_v20 = vmul.f32 %v2065_v11, %v2061_v15 }
0x105f   :  { %v2066_v23 = vmul.f32 %v2065_v11, %v2060_v19 }
0x1060   :  { %v2073_v24 = vadd.f32 %v2071_v18, %v2067_v20 }
0x1061   :  { %v2072_v25 = vadd.f32 %v2071_v18, %v2066_v23 }
0x1062   :  { %2075 = vst.msk [vmem:[#allocation5 + $0x8] sm:$0xff] %vm50_vm0, %v2073_v24 }
0x1063   :  { %2074 = vst.msk [vmem:[#allocation5] sm:$0xff] %vm50_vm0, %v2072_v25 }
0x1064   :  { %2505 = shalt.err (!%p2502_p6)
}
0x1065   :  { %s2506_s14 = scalar_lea.hbm %s2844_s4, 256 }
0x1066   :  { %p2507_p7 = scmp.ne.s32.totalorder %s2844_s4, %s2506_s14  ;;  %p2510_p8 = scmp.lt.u32.totalorder %s2506_s14, %s2844_s4 }
0x1068   :  { %p2512_p9 = pnand %p2510_p8, %p2507_p7 }
0x106a   :  { %2515 = shalt.err (!%p2512_p9)
}
0x106b   :  { %2087 = dma.vmem_to_hbm [thread:$0]  %s2082_s11, 256, %s2844_s4, [#allocation4], %s2523_s28, %s2523_s28, %s2524_s29  }
0x106c   :  { %2518 = dma.done.wait [#allocation4], 256  }
0x106d   :  { %2519 = vsyncadd [#allocation4], 4294967040 }
0x106e   :  { %2520 = dma.done.wait [#allocation7], 1024  }
0x106f   :  { %2521 = vsyncadd [#allocation7], 4294966272 }
0x1070   :  { %2106 = vsyncpa [#allocation3], 1 }
0x1071   :  { %2107 = vsyncpa [#allocation4], 1 }
0x1072   :  { %2108 = vsyncpa [#allocation7], 1 }

</bundles_post_ra>
